<compile_context>
chip_gen: v7x
topology: tpu7x:2x2x1
jax: 0.10.0
libtpu: 0.0.40
codegen_flags: <defaults>
</compile_context>

<pallas_src>
import functools
import math

import jax
import jax.numpy as jnp
from jax.experimental import pallas as pl
from jax.experimental.pallas import tpu as pltpu


def _round_width(width, multiplier, min_width=8, divisor=8):
    width *= multiplier
    min_width = min_width or divisor
    width_out = max(min_width, int(width + divisor / 2) // divisor * divisor)
    if width_out < 0.9 * width:
        width_out += divisor
    return int(width_out)


def _round_up(x, m):
    return ((x + m - 1) // m) * m


def _choose_s_tiling(S, c_in, c_out, vmem_budget=8 << 20):
    """Pick a lane-dense S tile (multiple of 128) bounded by a VMEM budget."""
    s128 = _round_up(S, 128)
    # double-buffered f32 input tile + f32 output tile per S row
    per_row = 2 * (c_in + c_out) * 4
    cap = max(128, min(512, (vmem_budget // per_row) // 128 * 128, s128))
    n_s = -(-s128 // cap)                       # ceil
    ts = _round_up(-(-s128 // n_s), 128)        # minimize padding waste
    s_pad = ts * n_s
    return ts, n_s, s_pad


# ----------------------------------------------------------------------------
# Pass 1: global average pool over S + squeeze-excite MLP -> gate (N, 1, C_out)
# ----------------------------------------------------------------------------
def _gate_kernel(inv_s, x_ref, w1t_ref, b1_ref, w2t_ref, b2_ref, g_ref, acc_ref):
    s = pl.program_id(1)

    @pl.when(s == 0)
    def _():
        acc_ref[...] = jnp.zeros_like(acc_ref)

    # x_ref: (1, C_in, TS); accumulate lane-sum -> (C_in, 1)
    acc_ref[...] += jnp.sum(x_ref[0], axis=-1, keepdims=True)

    @pl.when(s == pl.num_programs(1) - 1)
    def _():
        pooled = acc_ref[...] * inv_s                                  # (C_in, 1)
        # fc1 + ReLU: (C_in, B) * (C_in, 1) summed over channels -> (1, B)
        h = jnp.sum(w1t_ref[...] * pooled, axis=0, keepdims=True) + b1_ref[...]
        h = jnp.maximum(h, 0.0)
        # fc2 + Sigmoid: (1, B) @ (B, C_out) -> (1, C_out)
        g = jnp.dot(h, w2t_ref[...], preferred_element_type=jnp.float32)
        g = jax.nn.sigmoid(g + b2_ref[...])
        g_ref[0] = g.astype(g_ref.dtype)


# ----------------------------------------------------------------------------
# Pass 2: re = W_re @ x_tile + b_re ; out = re * gate  (S-tiled, bf16 MXU)
# ----------------------------------------------------------------------------
def _se_apply_kernel(x_ref, w_ref, b_ref, g_ref, o_ref):
    x = x_ref[0].astype(jnp.bfloat16)                                  # (C_in, TS)
    re = jnp.dot(w_ref[...], x, preferred_element_type=jnp.float32)    # (C_out, TS)
    re = re + b_ref[...]
    o_ref[0] = (re * g_ref[0]).astype(o_ref.dtype)


def se_module_forward(x_ncthw, params):
    """x_ncthw: (N, C_in, T, H, W) float32.  Returns (N, C_out, T, H, W)."""
    N, C_in, T, H, W = x_ncthw.shape
    S = T * H * W
    w_re, b_re, w1, b1, w2, b2 = params
    C_out = w_re.shape[0]
    Bk = w1.shape[0]

    TS, n_s, S_pad = _choose_s_tiling(S, C_in, C_out)

    # (N, C_in, S) — contiguous collapse, no transpose. Pad S to TS * n_s.
    x_ncs = x_ncthw.reshape(N, C_in, S)
    if S_pad != S:
        x_ncs = jnp.pad(x_ncs, ((0, 0), (0, 0), (0, S_pad - S)))

    # Small resident parameters.
    w1t = jnp.transpose(w1)                     # (C_in, Bk)
    w2t = jnp.transpose(w2)                     # (Bk, C_out)
    b1_row = b1.reshape(1, Bk)
    b2_row = b2.reshape(1, C_out)
    wre_bf = w_re.astype(jnp.bfloat16)          # (C_out, C_in), bf16 MXU input
    bre_col = b_re.reshape(C_out, 1)

    full = lambda n, s: (0, 0)

    # ---- Pass 1: gate g (N, 1, C_out) -------------------------------------
    g_row = pl.pallas_call(
        functools.partial(_gate_kernel, 1.0 / float(S)),
        out_shape=jax.ShapeDtypeStruct((N, 1, C_out), jnp.float32),
        grid_spec=pltpu.PrefetchScalarGridSpec(
            num_scalar_prefetch=0,
            grid=(N, n_s),
            in_specs=[
                pl.BlockSpec((1, C_in, TS), lambda n, s: (n, 0, s)),
                pl.BlockSpec((C_in, Bk), full),
                pl.BlockSpec((1, Bk), full),
                pl.BlockSpec((Bk, C_out), full),
                pl.BlockSpec((1, C_out), full),
            ],
            out_specs=pl.BlockSpec((1, 1, C_out), lambda n, s: (n, 0, 0)),
            scratch_shapes=[pltpu.VMEM((C_in, 1), jnp.float32)],
        ),
        compiler_params=pltpu.CompilerParams(
            dimension_semantics=("parallel", "arbitrary")),
    )(x_ncs, w1t, b1_row, w2t, b2_row)

    # Tiny (N, C_out) transpose so the gate broadcasts along lanes in pass 2.
    g_col = jnp.transpose(g_row, (0, 2, 1))     # (N, C_out, 1)

    # ---- Pass 2: fc_re + gating multiply, S-tiled --------------------------
    out_pad = pl.pallas_call(
        _se_apply_kernel,
        out_shape=jax.ShapeDtypeStruct((N, C_out, S_pad), x_ncthw.dtype),
        grid_spec=pltpu.PrefetchScalarGridSpec(
            num_scalar_prefetch=0,
            grid=(N, n_s),
            in_specs=[
                pl.BlockSpec((1, C_in, TS), lambda n, s: (n, 0, s)),
                pl.BlockSpec((C_out, C_in), full),
                pl.BlockSpec((C_out, 1), full),
                pl.BlockSpec((1, C_out, 1), lambda n, s: (n, 0, 0)),
            ],
            out_specs=pl.BlockSpec((1, C_out, TS), lambda n, s: (n, 0, s)),
        ),
        compiler_params=pltpu.CompilerParams(
            dimension_semantics=("parallel", "parallel")),
    )(x_ncs, wre_bf, bre_col, g_col)

    return out_pad[:, :, :S].reshape(N, C_out, T, H, W)


def init_params(key, in_channels, out_channels, reduction):
    bottleneck = _round_width(in_channels, reduction)
    ks = jax.random.split(key, 6)
    w_re = jax.random.normal(ks[0], (out_channels, in_channels), jnp.float32) * 0.1
    b_re = jax.random.normal(ks[1], (out_channels,), jnp.float32) * 0.1
    w1 = jax.random.normal(ks[2], (bottleneck, in_channels), jnp.float32) * 0.1
    b1 = jax.random.normal(ks[3], (bottleneck,), jnp.float32) * 0.1
    w2 = jax.random.normal(ks[4], (out_channels, bottleneck), jnp.float32) * 0.1
    b2 = jax.random.normal(ks[5], (out_channels,), jnp.float32) * 0.1
    return (w_re, b_re, w1, b1, w2, b2)


def se_module_reference(x, params):
    """Plain-JAX (f32) reference mirroring the PyTorch forward."""
    w_re, b_re, w1, b1, w2, b2 = params
    N, C_in, T, H, W = x.shape
    xf = x.reshape(N, C_in, -1)                                      # (N, C_in, S)
    module_input = jnp.einsum('oc,ncs->nos', w_re, xf) + b_re[None, :, None]
    pooled = jnp.mean(xf, axis=-1)                                   # (N, C_in)
    h = jnp.maximum(pooled @ w1.T + b1, 0.0)
    g = jax.nn.sigmoid(h @ w2.T + b2)                                # (N, C_out)
    out = module_input * g[:, :, None]
    return out.reshape(N, -1, T, H, W)


if __name__ == "__main__":
    in_channels, out_channels, reduction = 4, 8, 2
    N, T, H, W = 2, 4, 14, 14   # S = 784 -> exercises S-tiling + lane padding

    key = jax.random.PRNGKey(0)
    k_x, k_p = jax.random.split(key)
    x = jax.random.normal(k_x, (N, in_channels, T, H, W), jnp.float32)
    params = init_params(k_p, in_channels, out_channels, reduction)

    out = jax.block_until_ready(se_module_forward(x, params))
    ref = se_module_reference(x, params)

    assert out.shape == ref.shape
    # bf16 MXU inputs in the fc_re matmul -> compare at bf16-appropriate tolerance.
    assert jnp.allclose(out, ref, atol=2e-2, rtol=2e-2), "mismatch vs reference"

    print("KERNEL_OK")
</pallas_src>

<mosaic_0001>
module attributes {stable_mosaic.version = 11 : i64} {
  func.func @_gate_kernel(%arg0: i32, %arg1: i32, %arg2: memref<1x4x512xf32, #tpu.memory_space<vmem>>, %arg3: memref<4x8xf32, #tpu.memory_space<vmem>>, %arg4: memref<1x8xf32, #tpu.memory_space<vmem>>, %arg5: memref<8x8xf32, #tpu.memory_space<vmem>>, %arg6: memref<1x8xf32, #tpu.memory_space<vmem>>, %arg7: memref<1x1x8xf32, #tpu.memory_space<vmem>>, %arg8: memref<4x1xf32, #tpu.memory_space<vmem>>) attributes {dimension_semantics = [#tpu.dimension_semantics<parallel>, #tpu.dimension_semantics<arbitrary>], iteration_bounds = array<i64: 2, 2>, scalar_prefetch = 0 : i64, scratch_operands = 1 : i64, tpu.core_type = #tpu.core_type<tc>, window_params = [{transform_indices = @transform_0, window_bounds = array<i64: 1, 4, 512>}, {pipeline_mode = #tpu.pipeline_mode<synchronous>, transform_indices = @transform_1, window_bounds = array<i64: 4, 8>}, {pipeline_mode = #tpu.pipeline_mode<synchronous>, transform_indices = @transform_2, window_bounds = array<i64: 1, 8>}, {pipeline_mode = #tpu.pipeline_mode<synchronous>, transform_indices = @transform_3, window_bounds = array<i64: 8, 8>}, {pipeline_mode = #tpu.pipeline_mode<synchronous>, transform_indices = @transform_4, window_bounds = array<i64: 1, 8>}, {transform_indices = @transform_5, window_bounds = array<i64: 1, 1, 8>}]} {
    %c0_i32 = arith.constant 0 : i32
    %0 = arith.cmpi eq, %arg1, %c0_i32 : i32
    %1 = arith.extui %0 : i1 to i32
    %c0_i32_0 = arith.constant 0 : i32
    %2 = arith.cmpi ne, %1, %c0_i32_0 : i32
    scf.if %2 {
      %cst_8 = arith.constant 0.000000e+00 : f32
      %13 = vector.broadcast %cst_8 : f32 to vector<4x1xf32>
      %c0_9 = arith.constant 0 : index
      %c0_10 = arith.constant 0 : index
      %14 = vector.load %arg8[%c0_9, %c0_10] : memref<4x1xf32, #tpu.memory_space<vmem>>, vector<4x1xf32>
      tpu.vector_store %arg8[%c0_9, %c0_10], %13 {strides = array<i32>} : memref<4x1xf32, #tpu.memory_space<vmem>>, vector<4x1xf32>,
    } else {
    }
    %c0 = arith.constant 0 : index
    %c0_1 = arith.constant 0 : index
    %3 = vector.load %arg8[%c0, %c0_1] : memref<4x1xf32, #tpu.memory_space<vmem>>, vector<4x1xf32>
    %c0_2 = arith.constant 0 : index
    %c0_3 = arith.constant 0 : index
    %c0_4 = arith.constant 0 : index
    %4 = vector.load %arg2[%c0_2, %c0_3, %c0_4] : memref<1x4x512xf32, #tpu.memory_space<vmem>>, vector<1x4x512xf32>
    %5 = vector.shape_cast %4 : vector<1x4x512xf32> to vector<4x512xf32>
    %cst = arith.constant dense<0.000000e+00> : vector<4xf32>
    %6 = vector.multi_reduction <add>, %5, %cst [1] : vector<4x512xf32> to vector<4xf32>
    %7 = vector.shape_cast %6 : vector<4xf32> to vector<4x1xf32>
    %8 = arith.addf %3, %7 : vector<4x1xf32>
    %c0_5 = arith.constant 0 : index
    %c0_6 = arith.constant 0 : index
    %9 = vector.load %arg8[%c0_5, %c0_6] : memref<4x1xf32, #tpu.memory_space<vmem>>, vector<4x1xf32>
    tpu.vector_store %arg8[%c0_5, %c0_6], %8 {strides = array<i32>} : memref<4x1xf32, #tpu.memory_space<vmem>>, vector<4x1xf32>,
    %c1_i32 = arith.constant 1 : i32
    %10 = arith.cmpi eq, %arg1, %c1_i32 : i32
    %11 = arith.extui %10 : i1 to i32
    %c0_i32_7 = arith.constant 0 : i32
    %12 = arith.cmpi ne, %11, %c0_i32_7 : i32
    scf.if %12 {
      %c0_8 = arith.constant 0 : index
      %c0_9 = arith.constant 0 : index
      %13 = vector.load %arg8[%c0_8, %c0_9] : memref<4x1xf32, #tpu.memory_space<vmem>>, vector<4x1xf32>
      %cst_10 = arith.constant 0.00127551018 : f32
      %14 = vector.broadcast %cst_10 : f32 to vector<4x1xf32>
      %15 = arith.mulf %13, %14 : vector<4x1xf32>
      %c0_11 = arith.constant 0 : index
      %c0_12 = arith.constant 0 : index
      %16 = vector.load %arg3[%c0_11, %c0_12] : memref<4x8xf32, #tpu.memory_space<vmem>>, vector<4x8xf32>
      %17 = vector.broadcast %15 : vector<4x1xf32> to vector<4x8xf32>
      %18 = arith.mulf %16, %17 : vector<4x8xf32>
      %cst_13 = arith.constant dense<0.000000e+00> : vector<8xf32>
      %19 = vector.multi_reduction <add>, %18, %cst_13 [0] : vector<4x8xf32> to vector<8xf32>
      %20 = vector.shape_cast %19 : vector<8xf32> to vector<1x8xf32>
      %c0_14 = arith.constant 0 : index
      %c0_15 = arith.constant 0 : index
      %21 = vector.load %arg4[%c0_14, %c0_15] : memref<1x8xf32, #tpu.memory_space<vmem>>, vector<1x8xf32>
      %22 = arith.addf %20, %21 : vector<1x8xf32>
      %cst_16 = arith.constant 0.000000e+00 : f32
      %23 = vector.broadcast %cst_16 : f32 to vector<1x8xf32>
      %24 = arith.maximumf %22, %23 : vector<1x8xf32>
      %c0_17 = arith.constant 0 : index
      %c0_18 = arith.constant 0 : index
      %25 = vector.load %arg5[%c0_17, %c0_18] : memref<8x8xf32, #tpu.memory_space<vmem>>, vector<8x8xf32>
      %cst_19 = arith.constant dense<0.000000e+00> : vector<1x8xf32>
      %26 = tpu.matmul %24, %25, %cst_19 {dimension_numbers = #tpu.dot_dimension_numbers<[1], [0], [0], [1], [0, 0, 1, 1], [], []>} : vector<1x8xf32>, vector<8x8xf32>, vector<1x8xf32> -> vector<1x8xf32>
      %c0_20 = arith.constant 0 : index
      %c0_21 = arith.constant 0 : index
      %27 = vector.load %arg6[%c0_20, %c0_21] : memref<1x8xf32, #tpu.memory_space<vmem>>, vector<1x8xf32>
      %28 = arith.addf %26, %27 : vector<1x8xf32>
      %29 = arith.negf %28 : vector<1x8xf32>
      %30 = math.exp %29 : vector<1x8xf32>
      %cst_22 = arith.constant 1.000000e+00 : f32
      %31 = vector.broadcast %cst_22 : f32 to vector<1x8xf32>
      %32 = arith.addf %31, %30 : vector<1x8xf32>
      %33 = arith.divf %31, %32 : vector<1x8xf32>
      %c0_23 = arith.constant 0 : index
      %c0_24 = arith.constant 0 : index
      %c0_25 = arith.constant 0 : index
      %34 = vector.load %arg7[%c0_23, %c0_24, %c0_25] : memref<1x1x8xf32, #tpu.memory_space<vmem>>, vector<1x1x8xf32>
      %35 = vector.shape_cast %34 : vector<1x1x8xf32> to vector<1x8xf32>
      %36 = vector.shape_cast %33 : vector<1x8xf32> to vector<1x1x8xf32>
      tpu.vector_store %arg7[%c0_23, %c0_24, %c0_25], %36 {strides = array<i32>} : memref<1x1x8xf32, #tpu.memory_space<vmem>>, vector<1x1x8xf32>,
    } else {
    }
    return
  }
  func.func @transform_0(%arg0: i32, %arg1: i32) -> (i32, i32, i32) {
    %c0_i32 = arith.constant 0 : i32
    %c0_i32_0 = arith.constant 0 : i32
    return %arg0, %c0_i32, %arg1 : i32, i32, i32
  }
  func.func @transform_1(%arg0: i32, %arg1: i32) -> (i32, i32) {
    %c0_i32 = arith.constant 0 : i32
    %c0_i32_0 = arith.constant 0 : i32
    %c0_i32_1 = arith.constant 0 : i32
    return %c0_i32, %c0_i32_0 : i32, i32
  }
  func.func @transform_2(%arg0: i32, %arg1: i32) -> (i32, i32) {
    %c0_i32 = arith.constant 0 : i32
    %c0_i32_0 = arith.constant 0 : i32
    %c0_i32_1 = arith.constant 0 : i32
    return %c0_i32, %c0_i32_0 : i32, i32
  }
  func.func @transform_3(%arg0: i32, %arg1: i32) -> (i32, i32) {
    %c0_i32 = arith.constant 0 : i32
    %c0_i32_0 = arith.constant 0 : i32
    %c0_i32_1 = arith.constant 0 : i32
    return %c0_i32, %c0_i32_0 : i32, i32
  }
  func.func @transform_4(%arg0: i32, %arg1: i32) -> (i32, i32) {
    %c0_i32 = arith.constant 0 : i32
    %c0_i32_0 = arith.constant 0 : i32
    %c0_i32_1 = arith.constant 0 : i32
    return %c0_i32, %c0_i32_0 : i32, i32
  }
  func.func @transform_5(%arg0: i32, %arg1: i32) -> (i32, i32, i32) {
    %c0_i32 = arith.constant 0 : i32
    %c0_i32_0 = arith.constant 0 : i32
    %c0_i32_1 = arith.constant 0 : i32
    return %arg0, %c0_i32, %c0_i32_0 : i32, i32, i32
  }
}

</mosaic_0001>

<bundles_post_ra>
// kernel: tpu_custom_call.1
= control target key start
LH: loop header
LB: loop body
LE: loop exit
PB: predicated region body
PF: predicated region fallthrough
CT: control target
= control target key end

     0   :  { %s1153_s0 = inlined_call_operand.hbm [shape: f32[2,4,1024], index: 0, kind: input, shape index: {}]   ;;  %s1154_s1 = inlined_call_operand.hbm [shape: f32[4,8], index: 1, kind: input, shape index: {}]   ;;  %s1155_s2 = inlined_call_operand.vmem [shape: f32[1,8], index: 2, kind: input, shape index: {}]   ;;  %s1156_s3 = inlined_call_operand.vmem [shape: f32[8,8], index: 3, kind: input, shape index: {}]   ;;  %s1157_s4 = inlined_call_operand.vmem [shape: f32[1,8], index: 4, kind: input, shape index: {}]   ;;  %s1158_s5 = inlined_call_operand.hbm [shape: f32[2,1,8], index: 5, kind: output, shape index: {}]  }
   0x1   :  { %1171 = sst [smem:[#allocation18_spill]] %s1154_s1 }
   0x2   :  { %1172 = sst [smem:[#allocation19_spill]] %s1157_s4 }
   0x3   :  { %1173 = sst [smem:[#allocation20_spill]] %s1158_s5 }
   0x4   :  { %10 = vsyncpa [#allocation4], 0 }
   0x5   :  { %12 = vsyncpa [#allocation4 + $0x1], 0 }
   0x6   :  { %13 = vsyncpa [#allocation7], 0 }
   0x7   :  { %14 = vsyncpa [#allocation5], 0 }
   0x8   :  { %16 = vsyncpa [#allocation5 + $0x1], 0  ;;  %s882_s18 = smov 0   ;;  %s884_s19 = smov 0  }
   0x9   :  { %s886_s20 = smov 0   ;;  %s888_s21 = smov 0  }
   0xa   :  { %s890_s22 = smov 0   ;;  %s892_s23 = smov 0  }
   0xb   :  { %s894_s24 = smov 0   ;;  %s896_s25 = smov 0  }
   0xc   :  { %s898_s26 = smov 0   ;;  %s900_s27 = smov 0  }
   0xd   :  { %s902_s28 = smov 0  }
   0xe LB: > { %1174 = sst [smem:[#allocation12_spill]] %s803_s18  ;;  %s509_s29 = sadd.s32 4294967295, %s843_s28   ;;  %s843_s28 = sphi %s902_s28, %s22_s28   ;;  %s839_s27 = sphi %s900_s27, %s1212_s27   ;;  %s835_s26 = sphi %s898_s26, %s1211_s26   ;;  %s831_s25 = sphi %s896_s25, %s1210_s25   ;;  %s827_s24 = sphi %s894_s24, %s1209_s24   ;;  %s823_s23 = sphi %s892_s23, %s1208_s23   ;;  %s819_s22 = sphi %s890_s22, %s1207_s22   ;;  %s815_s21 = sphi %s888_s21, %s1206_s21   ;;  %s811_s20 = sphi %s886_s20, %s1205_s20   ;;  %s807_s19 = sphi %s884_s19, %s1204_s19   ;;  %s803_s18 = sphi %s882_s18, %s1203_s18  }
   0xf   : > { %1175 = sst [smem:[#allocation13_spill]] %s831_s25  ;;  %s510_s30 = sadd.s32 4294967294, %s843_s28  }
  0x10   : > { %p56_p0 = scmp.ne.s32.totalorder %s819_s22, %s815_s21  ;;  %p938_p1 = scmp.eq.s32.totalorder %s509_s29, 0 }
  0x11   : > { %p163_p2 = scmp.ne.s32.totalorder %s811_s20, %s807_s19  ;;  %p164_p4 = scmp.eq.s32.totalorder %s509_s29, 3 }
  0x12   : > { %s1176_s6 = scalar_select %p938_p1, 1, 0 }
  0x13   : > { %p947_p3 = por %p938_p1, %p56_p0  ;;  %p169_p5 = scmp.ne.s32.totalorder %s807_s19, %s803_s18 }
  0x14   : > { %p170_p6 = scmp.eq.s32.totalorder %s510_s30, 3  ;;  %p953_p7 = por %p164_p4, %p163_p2 }
  0x15   : > { %s1177_s8 = scalar_select %p947_p3, 1, 0 }
  0x16   : > { %s1178_s9 = scalar_select %p953_p7, 1, 0 }
  0x17   : > { %p511_p8 = scmp.ge.s32.totalorder %s843_s28, 1  ;;  %p958_p9 = por %p170_p6, %p169_p5 }
  0x18   : > { %1179 = sst [smem:[#allocation14_spill]] %s1178_s9  ;;  %p177_p10 = scmp.lt.s32.totalorder %s843_s28, 5 }
  0x19   : > { %s1180_s10 = scalar_select %p958_p9, 1, 0 }
  0x1a   : > { %p963_p11 = pnand %p511_p8, %p177_p10  ;;  %s845_s12 = smov [#allocation6]  }
  0x1b   : > { %1181 = sst [smem:[#allocation15_spill]] %s1180_s10  ;;  %s190_s13 = sshll.u32 %s845_s12, 4  ;;  %s191_s13 = int_to_ptr.vmem [resolvable:$true] %s190_s13 }
  0x1c   : > { %s1182_s11 = scalar_select %p963_p11, 1, 0 }
  0x1d   : > { %p543_p12 = pneg %p963_p11  ;;  %s31_s15 = sadd.s32 1, %s835_s26 }
  0x1e   : > { %s1184_s1 = sld [smem:[#allocation18_spill]] }
  0x1f   : > { %p971_p13 = pnand %p543_p12, %p938_p1 }
  0x21   : > { %p661_p2 = pneg %p971_p13 }
  0x24   : > { %s659_s21 = scalar_lea.hbm %s1184_s1, 64 }
  0x25   : > { %p660_p0 = scmp.ne.s32.totalorder %s1184_s1, %s659_s21  ;;  %p666_p6 = scmp.lt.u32.totalorder %s659_s21, %s1184_s1 }
  0x27   : > { %p662_p4 = pnand %p661_p2, %p660_p0 }
  0x29   : > { %p663_p5 = pneg %p662_p4 }
  0x2b   : > { %p668_p8 = pnand %p666_p6, %p663_p5 }
  0x2d   : > { %671 = shalt.err (!%p668_p8)
}
  0x2e   : > { %s672_s10 = scalar_lea.vmem %s191_s13, 64  ;;  %p680_p7 = scmp.lt.s32.totalorder %s191_s13, %s191_s13 }
  0x2f   : > { %p673_p10 = scmp.ne.s32.totalorder %s191_s13, %s672_s10  ;;  %p681_p1 = scmp.lt.s32.totalorder %s672_s10, %s672_s10 }
  0x31   : > { %p675_p12 = pnand %p673_p10, %p661_p2  ;;  %p682_p3 = por %p681_p1, %p680_p7 }
  0x33   : > { %p676_p9 = pneg %p675_p12 }
  0x35   : > { %p683_p11 = pnand %p682_p3, %p676_p9 }
  0x37   : > { %686 = shalt.err (!%p683_p11)
}
  0x38   : > { %546 = dma.hbm_to_vmem [thread:$0]  (!%p971_p13), %s1184_s1, 64, %s191_s13, [#allocation7]  }
  0x39   : > { %p32_p0 = scmp.ge.s32.totalorder %s31_s15, 2  ;;  %s34_s7 = sadd.s32 1, %s839_s27 }
  0x3a   : > { %s43_s10 = sadd.s32 1, %s823_s23  ;;  %p50_p1 = scmp.ne.s32.totalorder %s823_s23, %s819_s22 }
  0x3b   : > { %s1214_s15 = smov (%p32_p0, %s31_s15), 0  ;;  %s1216_s7 = smov (!%p32_p0, %s34_s7), %s839_s27 }
  0x3c   : > { %1185 = sst [smem:[#allocation16_spill]] %s1214_s15  ;;  %s39_s14 = ssub.s32 %s835_s26, %s1214_s15 }
  0x3d   : > { %p51_p3 = scmp.eq.s32.totalorder %s843_s28, 0  ;;  %p36_p7 = scmp.ge.s32.totalorder %s1216_s7, 2 }
  0x3e   : > { %p556_p9 = scmp.lt.s32.totalorder %s843_s28, 4  ;;  %s210_s13 = sand.u32 1, %s823_s23  }
  0x3f   : > { %p1003_p11 = por %p51_p3, %p50_p1  ;;  %s1218_s7 = smov (%p36_p7, %s1216_s7), 0 }
  0x40   : > { %1187 = sst [smem:[#allocation17_spill]] %s1218_s7  ;;  %s514_s29 = sshll.u32 %s210_s13, 4 }
  0x41   : > { %s38_s30 = ssub.s32 %s839_s27, %s1218_s7  ;;  %s515_s16 = sshll.u32 %s835_s26, 2 }
  0x42   : > { %s40_s12 = sor.u32 %s39_s14, %s38_s30  ;;  %p151_p13 = scmp.eq.s32.totalorder %s38_s30, 0 }
  0x43   : > { %p41_p2 = scmp.eq.s32.totalorder %s40_s12, 0  ;;  %s1188_s17 = sadd.s32 1, %s811_s20 }
  0x44   : > { %s1016_s1 = scalar_select %p151_p13, %s811_s20, %s1188_s17  }
  0x45   : > { %s1019_s15 = scalar_select %p41_p2, %s823_s23, %s43_s10  }
  0x46   : > { %s516_s18 = sshll.u32 %s839_s27, 3  ;;  %s214_s5 = scalar_lea.vmem [#allocation3], %s514_s29 }
  0x47   : > { %s224_s9 = sshll.u32 %s214_s5, 4  ;;  %s220_s25 = sadd.s32 %s516_s18, %s515_s16  ;;  %s1022_s9 = int_to_ptr.vmem [resolvable:$true] %s224_s9 }
  0x48   : > { %s517_s4 = sshll.u32 %s220_s25, 6  ;;  %p1028_p4 = pnand %p556_p9, %p1003_p11 }
  0x49   : > { %s1035_s10 = scalar_lea.hbm %s1153_s0, %s517_s4  ;;  %s211_s5 = scalar_lea.sflag [#allocation4], %s210_s13 }
  0x4a   : > { %s687_s18 = scalar_lea.hbm %s1035_s10, 256  ;;  %p689_p6 = pneg %p1028_p4 }
  0x4b   : > { %p688_p5 = scmp.ne.s32.totalorder %s1035_s10, %s687_s18  ;;  %s692_s29 = scalar_lea.hbm %s1153_s0, 1024 }
  0x4c   : > { %p693_p12 = scmp.lt.u32.totalorder %s1035_s10, %s1153_s0  ;;  %p694_p0 = scmp.lt.u32.totalorder %s692_s29, %s687_s18 }
  0x4d   : > { %p690_p8 = pnand %p689_p6, %p688_p5  ;;  %p696_p3 = scmp.lt.u32.totalorder %s687_s18, %s1035_s10 }
  0x4e   : > { %p695_p1 = por %p694_p0, %p693_p12 }
  0x4f   : > { %p691_p10 = pneg %p690_p8 }
  0x50   : > { %p697_p7 = por %p696_p3, %p695_p1 }
  0x52   : > { %p698_p9 = pnand %p697_p7, %p691_p10 }
  0x54   : > { %701 = shalt.err (!%p698_p9)
}
  0x55   : > { %s702_s13 = scalar_lea.vmem %s1022_s9, 256  ;;  %s846_s16 = smov [#allocation3]  }
  0x56   : > { %p703_p11 = scmp.ne.s32.totalorder %s1022_s9, %s702_s13  ;;  %s707_s17 = sshll.u32 %s846_s16, 4  ;;  %s708_s17 = int_to_ptr.vmem [resolvable:$false] %s707_s17 }
  0x57   : > { %s709_s14 = scalar_lea.vmem %s708_s17, 512  ;;  %p710_p5 = scmp.lt.s32.totalorder %s1022_s9, %s708_s17 }
  0x58   : > { %p705_p13 = pnand %p703_p11, %p689_p6  ;;  %p711_p8 = scmp.lt.s32.totalorder %s709_s14, %s702_s13 }
  0x5a   : > { %p706_p2 = pneg %p705_p13  ;;  %p712_p12 = por %p711_p8, %p710_p5 }
  0x5c   : > { %p713_p0 = pnand %p712_p12, %p706_p2 }
  0x5e   : > { %716 = shalt.err (!%p713_p0)
}
  0x5f   : > { %550 = dma.hbm_to_vmem [thread:$0]  (!%p1028_p4), %s1035_s10, 256, %s1022_s9, %s211_s5  }
  0x60   : > { %p1190_p10 = scmp.ne.s32.totalorder %s1182_s11, 0 }
  0x61   : > { %s235_s30 = sand.u32 (!%p1190_p10), 1, %s819_s22   ;;  %p1191_p6 = scmp.ne.s32.totalorder (!%p1190_p10), %s1177_s8, 0 }
  0x62   : > { %233 = sbr.rel (%p1190_p10) target bundleno = 697 (0x2b9), region = 40  ;;  %s519_s18 = sshll.u32 (!%p1190_p10), %s235_s30, 4 }
  0x63   : > { %s236_s25 = scalar_lea.sflag (!%p1190_p10), [#allocation4], %s235_s30  ;;  %s239_s21 = scalar_lea.vmem (!%p1190_p10), [#allocation3], %s519_s18 }
  0x69   : > { %790 = dma.done.wait (%p1191_p6), %s236_s25, 256  }
  0x6a   : > { %792 = vsyncadd (%p1191_p6), %s236_s25, 4294967040  ;;  %p1192_p1 = scmp.ne.s32.totalorder %s1176_s6, 0 }
  0x6c   : > { %794 = dma.done.wait (%p1192_p1), [#allocation7], 64  }
  0x6d   : > { %796 = vsyncadd (%p1192_p1), [#allocation7], 4294967232  ;;  %s267_s9 = sand.u32 1, %s807_s19   ;;  %p521_p4 = scmp.ne.s32.totalorder %s827_s24, 0 }
  0x6e   : > { %s1076_s11 = scalar_lea.vmem [#allocation8], %s267_s9  ;;  %vm274_vm0 = vcmask (!%p521_p4), 3072   ;;  %v847_v0 = vmov (!%p521_p4), 0.0  }
  0x6f   : > { %273 = sbr.rel (%p521_p4) target bundleno = 118 (0x76), region = 52  ;;  %275 = vst.msk [vmem:[#allocation2] sm:$0xf] (!%p521_p4), %vm274_vm0, %v847_v0 }
  0x76 PF: > { %v277_v1 = vld [vmem:[%s239_s21] sm:$0xff]  ;;  %v278_v2 = vld [vmem:[%s239_s21 + $0x8] sm:$0xff]  ;;  %vm285_vm1 = vcmask 1043456   ;;  %vm296_vm2 = vcmask 3072   ;;  %p522_p3 = scmp.ne.s32.totalorder %s827_s24, 1 }
  0x77   : > { %v281_v3 = vcombine.high %v277_v1, %v277_v1  ;;  %v282_v4 = vcombine.high %v278_v2, %v278_v2  ;;  %v286_v5 = vsel %vm285_vm1, %v277_v1, 0.0  ;;  %v289_v7 = vsel %vm285_vm1, %v278_v2, 0.0  ;;  %v276_v12 = vld [vmem:[#allocation2] sm:$0xf]  ;;  %v304_v20 = vld [vmem:[#allocation6] sm:$0xf] (!%p522_p3) }
  0x78   : > { %v848_v16 = vmov (!%p522_p3), 0   ;;  %v322_v18 = vld [vmem:[%s1156_s3] sm:$0xff] (!%p522_p3)  ;;  %v849_v19 = vmov (!%p522_p3), 0.0   ;;  %vm850_vm3 = vmmov (!%p522_p3), 0   ;;  %vm311_vm4 = vcmask (!%p522_p3), 60416   ;;  %s1193_s29 = sld [smem:[#allocation19_spill]] (!%p522_p3) }
  0x79   : > { %v287_v6 = vsel %vm285_vm1, %v281_v3, 0.0  ;;  %v291_v9 = vsel %vm285_vm1, %v282_v4, 0.0  ;;  %654 = vset.pattern.permute.xlu0 (!%p522_p3), %v848_v16  ;;  %530 = vmatprep.subr.mxu0 (!%p522_p3), %v849_v19  ;;  %v319_v29 = vld [vmem:[%s1155_s2] sm:$0x1] (!%p522_p3)  ;;  %vm324_vm5 = vcmask (!%p522_p3), 64512   ;;  %vm404_vm6 = vcmask (!%p522_p3), 57344  }
  0x7a   : > { %v288_v8 = vadd.f32 %v287_v6, %v286_v5  ;;  %532 = vmatprep.mubr.msk.f32.mxu0 (!%p522_p3), %vm850_vm3, %v849_v19  ;;  %531 = vmatpush3.msra.mxu0 (!%p522_p3), %v322_v18 }
  0x7c   : > { %v290_v10 = vadd.f32 %v289_v7, %v288_v8 }
  0x7e   : > { %v292_v11 = vadd.f32 %v291_v9, %v290_v10  ;;  %v323_v33 = vld [vmem:[%s1193_s29] sm:$0x1] (!%p522_p3) }
  0x80   : > { %293 = vadd.xlane.f32.xlu0 %v292_v11 }
 0x10a   : > { %301 = sbr.rel (%p522_p3) target bundleno = 670 (0x29e), region = 56 }
 0x10d   : > { %v294_v13 = vpop.xlane.xlu0 %293 }
 0x10e   : > { %v295_v14 = vadd.f32 %v294_v13, %v276_v12 }
 0x110   : > { %297 = vst.msk [vmem:[#allocation2] sm:$0xf] %vm296_vm2, %v295_v14 }
 0x117   : > { %v302_v15 = vld [vmem:[#allocation2] sm:$0xf] }
 0x118   : > { %v303_v17 = vmul.f32 0.0012755102, %v302_v15 }
 0x11a   : > { %307 = vperm.xlu0 %654, %v303_v17  }
 0x199   : > { %v308_v21 = vpop.permute.xlu0 %307 }
 0x19a   : > { %v310_v22 = vmul.f32 %v308_v21, %v304_v20 }
 0x19c   : > { %v312_v23 = vsel %vm311_vm4, %v310_v22, 0.0 }
 0x19d   : > { %v313_v24 = vrot.slane %v312_v23, 4 }
 0x19f   : > { %v314_v25 = vadd.f32 %v313_v24, %v312_v23 }
 0x1a1   : > { %v315_v26 = vrot.slane %v314_v25, 2 }
 0x1a3   : > { %v316_v27 = vadd.f32 %v315_v26, %v314_v25 }
 0x1a5   : > { %v317_v28 = vrot.slane %v316_v27, 1 }
 0x1a7   : > { %v318_v30 = vadd.f32 %v317_v28, %v316_v27 }
 0x1a9   : > { %v320_v31 = vadd.f32 %v319_v29, %v318_v30 }
 0x1ab   : > { %v321_v32 = vmax.f32 %v320_v31, 0.0 }
 0x1ad   : > { %533 = vmatmul.mubr.msk.f32.vlgmr.msra.gmra.mrb[0].mxu0 %vm324_vm5, %v321_v32 }
 0x280   : > { %v394_v34 = vpop.f32.mrb[0].mxu0 }
 0x281   : > { %v395_v35 = vadd.f32 %v394_v34, %v323_v33  ;;  %v534_v36 = vpop.f32.mrb[1].mxu0 }
 0x283   : > { %v524_v37 = vmul.f32 -1.442695, %v395_v35 }
 0x285   : > { %655 = vpow2.f32 %v524_v37 }
 0x28f   : > { %v656_v38 = vpop.eup %655 }
 0x290   : > { %v401_v39 = vadd.f32 1.0, %v656_v38 }
 0x292   : > { %657 = vrcp.f32 %v401_v39 }
 0x29c   : > { %v658_v40 = vpop.eup %657 }
 0x29d   : > { %405 = vst.msk [vmem:[%s1076_s11] sm:$0x1] %vm404_vm6, %v658_v40 }
 0x29e PF: > { %s1194_s12 = sld [smem:[#allocation13_spill]]  ;;  %s1195_s4 = sld [smem:[#allocation14_spill]] }
 0x29f   : > { %s1196_s14 = sld [smem:[#allocation20_spill]]  ;;  %s419_s18 = sshll.u32 %s1076_s11, 4  ;;  %s420_s18 = int_to_ptr.vmem [resolvable:$true] %s419_s18 }
 0x2a0   : > { %s407_s25 = scalar_lea.sflag [#allocation5], %s267_s9  ;;  %s717_s21 = scalar_lea.vmem %s420_s18, 16 }
 0x2a1   : > { %p718_p7 = scmp.ne.s32.totalorder %s420_s18, %s717_s21  ;;  %s851_s6 = smov [#allocation8]  }
 0x2a2   : > { %s721_s8 = sshll.u32 %s851_s6, 4  ;;  %s722_s8 = int_to_ptr.vmem [resolvable:$false] %s721_s8 }
 0x2a3   : > { %s723_s24 = scalar_lea.vmem %s722_s8, 32  ;;  %p724_p2 = scmp.lt.s32.totalorder %s420_s18, %s722_s8 }
 0x2a4   : > { %s525_s13 = sshll.u32 %s1194_s12, 4  ;;  %p1197_p9 = scmp.ne.s32.totalorder %s1195_s4, 0 }
 0x2a5   : > { %s1094_s30 = scalar_lea.hbm %s1196_s14, %s525_s13  ;;  %p725_p5 = scmp.lt.s32.totalorder %s723_s24, %s717_s21 }
 0x2a6   : > { %p719_p11 = pnand %p718_p7, %p1197_p9 }
 0x2a7   : > { %p726_p8 = por %p725_p5, %p724_p2 }
 0x2a8   : > { %p720_p13 = pneg %p719_p11 }
 0x2aa   : > { %p727_p12 = pnand %p726_p8, %p720_p13 }
 0x2ac   : > { %730 = shalt.err (!%p727_p12)
}
 0x2ad   : > { %s731_s9 = scalar_lea.hbm %s1094_s30, 16  ;;  %s735_s10 = scalar_lea.hbm %s1196_s14, 32 }
 0x2ae   : > { %p732_p0 = scmp.ne.s32.totalorder %s1094_s30, %s731_s9  ;;  %p736_p1 = scmp.lt.u32.totalorder %s1094_s30, %s1196_s14 }
 0x2af   : > { %p737_p4 = scmp.lt.u32.totalorder %s735_s10, %s731_s9  ;;  %p739_p7 = scmp.lt.u32.totalorder %s731_s9, %s1094_s30 }
 0x2b0   : > { %p733_p10 = pnand %p732_p0, %p1197_p9 }
 0x2b1   : > { %p738_p3 = por %p737_p4, %p736_p1 }
 0x2b2   : > { %p734_p6 = pneg %p733_p10 }
 0x2b3   : > { %p740_p11 = por %p739_p7, %p738_p3 }
 0x2b5   : > { %p741_p13 = pnand %p740_p11, %p734_p6 }
 0x2b7   : > { %744 = shalt.err (!%p741_p13)
}
 0x2b8   : > { %541 = dma.vmem_to_hbm [thread:$0]  (%p1197_p9), %s420_s18, 16, %s1094_s30, %s407_s25  }
 0x2b9 PF: > { %s1198_s12 = sld [smem:[#allocation12_spill]]  ;;  %s1199_s13 = sld [smem:[#allocation15_spill]] }
 0x2ba   : > { %p558_p2 = scmp.ge.s32.totalorder %s843_s28, 2 }
 0x2bf   : > { %s431_s16 = sand.u32 1, %s1198_s12   ;;  %p1200_p5 = scmp.ne.s32.totalorder %s1199_s13, 0 }
 0x2c0   : > { %s432_s17 = scalar_lea.sflag [#allocation5], %s431_s16 }
 0x2c1   : > { %p552_p8 = pnand %p558_p2, %p1200_p5 }
 0x2c3   : > { %798 = dma.done.wait (!%p552_p8), %s432_s17, 16  }
 0x2c4   : > { %800 = vsyncadd (!%p552_p8), %s432_s17, 4294967280  ;;  %s22_s28 = sadd.s32 1, %s843_s28   ;;  %s1201_s4 = sld [smem:[#allocation16_spill]] }
 0x2c5   : > { %p19_p12 = scmp.ge.s32.totalorder %s22_s28, 6   ;;  %s1202_s30 = sld [smem:[#allocation17_spill]] }
 0x2c6   : > { %s1203_s18 = smov %s807_s19  ;;  %s1204_s19 = smov %s811_s20 }
 0x2c7   : > { %s1205_s20 = smov %s1016_s1  ;;  %s1206_s21 = smov %s819_s22 }
 0x2c8   : > { %s1207_s22 = smov %s823_s23  ;;  %s1208_s23 = smov %s1019_s15 }
 0x2c9   : > { %s1209_s24 = smov %s835_s26  ;;  %s1210_s25 = smov %s839_s27 }
 0x2ca   : > { %s1211_s26 = smov %s1201_s4  ;;  %21 = sbr.rel (!%p19_p12) target bundleno = 14 (0xe), region = 97 }
 0x2cb   : > { %s1212_s27 = smov %s1202_s30 }
 0x2d1   :  { %436 = vsyncpa [#allocation4], 1 }
 0x2d2   :  { %438 = vsyncpa [#allocation4 + $0x1], 1 }
 0x2d3   :  { %439 = vsyncpa [#allocation7], 1 }
 0x2d4   :  { %440 = vsyncpa [#allocation5], 1 }
 0x2d5   :  { %442 = vsyncpa [#allocation5 + $0x1], 1 }

</bundles_post_ra>
